<compile_context>
chip_gen: v5e
topology: v5e:2x2
jax: 0.10.0
libtpu: 0.0.40
codegen_flags: <defaults>
</compile_context>

<pallas_src>
import functools

import jax
import jax.numpy as jnp
import numpy as np
from jax.experimental import pallas as pl
from jax.experimental.pallas import tpu as pltpu

_SLAB = 2048  # lanes per inner compute slab (multiple of 128)


def _ce_loss_kernel(logits_ref, targets_ref, sum_ref, cnt_ref, *,
                    ignore_index, hw, tile_hw, slab, n_slabs, needs_mask):
    """One grid step: partial (sum of -log p_target, valid count) for its block."""
    p = pl.program_id(1)            # block index along the pixel (H*W) axis
    nb, c, _ = logits_ref.shape     # (images per step, classes, tile_hw)

    # Loop-invariant iotas, hoisted (JAX does not CSE broadcast_in_dim).
    cls = jax.lax.broadcasted_iota(jnp.int32, (1, c, slab), 1)      # class ids
    if needs_mask:
        lane = jax.lax.broadcasted_iota(jnp.int32, (1, 1, slab), 2)
        base = p * tile_hw

    def slab_stats(off):
        # Classes on sublanes, pixels on lanes.
        x = logits_ref[:, :, pl.ds(off, slab)].astype(jnp.float32)   # (nb, C, S)
        t = targets_ref[:, :, pl.ds(off, slab)]                      # (nb, 1, S)
        valid = t != ignore_index
        if needs_mask:
            # Lanes past the true H*W extent hold undefined DMA bytes.
            # Correctness relies on (a) the class reductions below never mixing
            # lanes (sublane-only max/sum), and (b) jnp.where not propagating
            # NaN/Inf from the unselected branch, so masking `valid` alone is
            # sufficient -- the garbage logits are intentionally left untouched.
            valid = valid & ((base + off + lane) < hw)

        # Numerically stable log-sum-exp over classes (sublane axis).
        m = jnp.max(x, axis=1, keepdims=True)                         # (nb,1,S)
        lse = jnp.log(jnp.sum(jnp.exp(x - m), axis=1, keepdims=True)) + m
        # Logit at the target class via a one-hot masked sum (no logp tile).
        x_t = jnp.sum(jnp.where(cls == t, x, 0.0), axis=1, keepdims=True)

        contrib = jnp.where(valid, lse - x_t, 0.0)                    # (nb,1,S)
        return (jnp.sum(contrib, axis=0),                             # (1, S)
                jnp.sum(valid.astype(jnp.float32), axis=0))           # (1, S)

    if n_slabs == 1:
        s, n = slab_stats(0)
    else:
        def body(i, carry):
            acc_s, acc_n = carry
            off = pl.multiple_of(i * slab, slab)
            s_i, n_i = slab_stats(off)
            return acc_s + s_i, acc_n + n_i

        zero = jnp.zeros((1, slab), jnp.float32)
        s, n = jax.lax.fori_loop(0, n_slabs, body, (zero, zero), unroll=2)

    sum_ref[...] = jnp.sum(s, keepdims=True)     # (1, 1) partial -logp sum
    cnt_ref[...] = jnp.sum(n, keepdims=True)     # (1, 1) partial valid count


def cross_entropy_loss_2d(logits_nchw, targets_nhw, *, ignore_index=11,
                          max_tile_hw=65536):
    """Mean cross-entropy over non-ignored pixels (weight=None, size_average=True).

    Matches nn.NLLLoss2d(weight=None, size_average=True, ignore_index=11) applied
    to F.log_softmax(inputs, dim=1).
    """
    N, C, H, W = logits_nchw.shape
    HW = H * W

    # Zero-copy reshapes: read NCHW directly (no transpose, no pad in HBM).
    x = logits_nchw.reshape(N, C, HW)
    t = targets_nhw.reshape(N, 1, HW)
    if t.dtype != jnp.int32:
        t = t.astype(jnp.int32)

    if HW <= _SLAB:
        # Tiny images: pack several images per grid step (amortise the ~0.35 us
        # fixed per-step overhead); single compute slab of the full image.
        tile_hw, slab, n_slabs = HW, HW, 1
        max_nb = max(1, (4 * _SLAB) // max(HW, 1))   # bound compute-intermediates
        nb = 1
        for d in range(min(N, max_nb), 0, -1):
            if N % d == 0:
                nb = d
                break
    else:
        nb = 1
        slab = _SLAB
        max_tile = max(_SLAB, (max_tile_hw // _SLAB) * _SLAB)
        if HW <= max_tile:
            # Round DOWN to a slab multiple (block never exceeds the array dim);
            # any ragged tail is handled by the in-kernel lane mask.
            tile_hw = (HW // _SLAB) * _SLAB
        else:
            # Prefer a multiple-of-slab divisor of HW so the mask is never needed.
            tile_hw = max_tile
            d = max_tile
            while d >= _SLAB:
                if HW % d == 0:
                    tile_hw = d
                    break
                d -= _SLAB
        n_slabs = tile_hw // slab

    n_bb = N // nb
    n_p = pl.cdiv(HW, tile_hw)
    needs_mask = (n_p * tile_hw) != HW

    kernel = functools.partial(
        _ce_loss_kernel, ignore_index=ignore_index, hw=HW, tile_hw=tile_hw,
        slab=slab, n_slabs=n_slabs, needs_mask=needs_mask)

    sums, counts = pl.pallas_call(
        kernel,
        out_shape=(jax.ShapeDtypeStruct((n_bb, n_p, 1, 1), jnp.float32),
                   jax.ShapeDtypeStruct((n_bb, n_p, 1, 1), jnp.float32)),
        grid_spec=pltpu.PrefetchScalarGridSpec(
            num_scalar_prefetch=0,
            grid=(n_bb, n_p),
            in_specs=[
                pl.BlockSpec((nb, C, tile_hw), lambda b, p: (b, 0, p)),
                pl.BlockSpec((nb, 1, tile_hw), lambda b, p: (b, 0, p)),
            ],
            out_specs=[
                pl.BlockSpec((None, None, 1, 1), lambda b, p: (b, p, 0, 0)),
                pl.BlockSpec((None, None, 1, 1), lambda b, p: (b, p, 0, 0)),
            ],
        ),
        compiler_params=pltpu.CompilerParams(
            dimension_semantics=("parallel", "parallel")),
    )(x, t)

    # size_average=True with weight=None: mean over non-ignored pixels.
    # (All-ignored input yields 0/0 = NaN, matching legacy PyTorch semantics.)
    return jnp.sum(sums) / jnp.sum(counts)


def _reference_loss(logits_nchw, targets_nhw, ignore_index=11):
    # pure-JAX reference for verification
    logp = jax.nn.log_softmax(logits_nchw.astype(jnp.float32), axis=1)
    t = targets_nhw.astype(jnp.int32)
    t_safe = jnp.where(t == ignore_index, 0, t)
    picked = jnp.take_along_axis(logp, t_safe[:, None, :, :], axis=1)[:, 0]
    valid = (t != ignore_index).astype(jnp.float32)
    return jnp.sum(-picked * valid) / jnp.sum(valid)


def _check(key, n, c, h, w):
    k_logits, k_targets = jax.random.split(key)
    logits = jax.random.normal(k_logits, (n, c, h, w), dtype=jnp.float32)
    targets = jax.random.randint(k_targets, (n, h, w), 0, c, dtype=jnp.int32)
    loss = cross_entropy_loss_2d(logits, targets, ignore_index=11)
    loss = jax.block_until_ready(loss)
    ref = _reference_loss(logits, targets, ignore_index=11)
    np.testing.assert_allclose(np.asarray(loss), np.asarray(ref),
                               rtol=1e-5, atol=1e-5)


if __name__ == "__main__":
    key = jax.random.PRNGKey(0)
    k1, k2 = jax.random.split(key)

    # CamVid-style: 12 channels, class 11 is the ignored "void" class.
    # Case 1: tiny image -> batched images per grid step (nb=2, single slab).
    _check(k1, n=2, c=12, h=16, w=16)
    # Case 2: exercises the strip-mined fori_loop (n_slabs=3), the ragged
    # trailing pixel block and the in-kernel tail mask.
    _check(k2, n=1, c=12, h=80, w=80)

    print("KERNEL_OK")
</pallas_src>

<mosaic_0001>
module attributes {stable_mosaic.version = 11 : i64} {
  func.func @_ce_loss_kernel(%arg0: i32, %arg1: i32, %arg2: memref<2x12x256xf32, #tpu.memory_space<vmem>>, %arg3: memref<2x1x256xi32, #tpu.memory_space<vmem>>, %arg4: memref<1x1x1x1xf32, #tpu.memory_space<vmem>>, %arg5: memref<1x1x1x1xf32, #tpu.memory_space<vmem>>) attributes {dimension_semantics = [#tpu.dimension_semantics<parallel>, #tpu.dimension_semantics<parallel>], iteration_bounds = array<i64: 1, 1>, scalar_prefetch = 0 : i64, scratch_operands = 0 : i64, tpu.core_type = #tpu.core_type<tc>, window_params = [{transform_indices = @transform_0, window_bounds = array<i64: 2, 12, 256>}, {transform_indices = @transform_1, window_bounds = array<i64: 2, 1, 256>}, {transform_indices = @transform_2, window_bounds = array<i64: 1, 1, 1, 1>}, {transform_indices = @transform_3, window_bounds = array<i64: 1, 1, 1, 1>}]} {
    %0 = tpu.iota {dimensions = array<i32: 1>} : vector<1x12x256xi32>
    %c0 = arith.constant 0 : index
    %c0_0 = arith.constant 0 : index
    %c0_1 = arith.constant 0 : index
    %1 = vector.load %arg2[%c0, %c0_0, %c0_1] : memref<2x12x256xf32, #tpu.memory_space<vmem>>, vector<2x12x256xf32>
    %c0_2 = arith.constant 0 : index
    %c0_3 = arith.constant 0 : index
    %c0_4 = arith.constant 0 : index
    %2 = vector.load %arg3[%c0_2, %c0_3, %c0_4] : memref<2x1x256xi32, #tpu.memory_space<vmem>>, vector<2x1x256xi32>
    %c11_i32 = arith.constant 11 : i32
    %3 = vector.broadcast %c11_i32 : i32 to vector<2x1x256xi32>
    %4 = arith.cmpi ne, %2, %3 : vector<2x1x256xi32>
    %cst = arith.constant dense<0xFF800000> : vector<2x256xf32>
    %5 = vector.multi_reduction <maximumf>, %1, %cst [1] : vector<2x12x256xf32> to vector<2x256xf32>
    %6 = vector.shape_cast %5 : vector<2x256xf32> to vector<2x1x256xf32>
    %7 = vector.broadcast %6 : vector<2x1x256xf32> to vector<2x12x256xf32>
    %8 = arith.subf %1, %7 : vector<2x12x256xf32>
    %9 = math.exp %8 : vector<2x12x256xf32>
    %cst_5 = arith.constant dense<0.000000e+00> : vector<2x256xf32>
    %10 = vector.multi_reduction <add>, %9, %cst_5 [1] : vector<2x12x256xf32> to vector<2x256xf32>
    %11 = vector.shape_cast %10 : vector<2x256xf32> to vector<2x1x256xf32>
    %12 = math.log %11 : vector<2x1x256xf32>
    %13 = arith.addf %12, %6 : vector<2x1x256xf32>
    %14 = vector.broadcast %0 : vector<1x12x256xi32> to vector<2x12x256xi32>
    %15 = vector.broadcast %2 : vector<2x1x256xi32> to vector<2x12x256xi32>
    %16 = arith.cmpi eq, %14, %15 : vector<2x12x256xi32>
    %cst_6 = arith.constant 0.000000e+00 : f32
    %17 = vector.broadcast %cst_6 : f32 to vector<2x12x256xf32>
    %18 = arith.select %16, %1, %17 : vector<2x12x256xi1>, vector<2x12x256xf32>
    %cst_7 = arith.constant dense<0.000000e+00> : vector<2x256xf32>
    %19 = vector.multi_reduction <add>, %18, %cst_7 [1] : vector<2x12x256xf32> to vector<2x256xf32>
    %20 = vector.shape_cast %19 : vector<2x256xf32> to vector<2x1x256xf32>
    %21 = arith.subf %13, %20 : vector<2x1x256xf32>
    %cst_8 = arith.constant 0.000000e+00 : f32
    %22 = vector.broadcast %cst_8 : f32 to vector<2x1x256xf32>
    %23 = arith.select %4, %21, %22 : vector<2x1x256xi1>, vector<2x1x256xf32>
    %cst_9 = arith.constant dense<0.000000e+00> : vector<1x256xf32>
    %24 = vector.multi_reduction <add>, %23, %cst_9 [0] : vector<2x1x256xf32> to vector<1x256xf32>
    %25 = arith.extui %4 : vector<2x1x256xi1> to vector<2x1x256xi32>
    %26 = arith.sitofp %25 : vector<2x1x256xi32> to vector<2x1x256xf32>
    %cst_10 = arith.constant dense<0.000000e+00> : vector<1x256xf32>
    %27 = vector.multi_reduction <add>, %26, %cst_10 [0] : vector<2x1x256xf32> to vector<1x256xf32>
    %28 = vector.shape_cast %24 : vector<1x256xf32> to vector<1x1x256xf32>
    %cst_11 = arith.constant dense<0.000000e+00> : vector<1xf32>
    %29 = vector.multi_reduction <add>, %28, %cst_11 [1, 2] : vector<1x1x256xf32> to vector<1xf32>
    %30 = vector.shape_cast %29 : vector<1xf32> to vector<1x1x1xf32>
    %31 = vector.extract %30[0, 0, 0] : f32 from vector<1x1x1xf32>
    %32 = vector.broadcast %31 : f32 to vector<1x1xf32>
    %c0_12 = arith.constant 0 : index
    %c0_13 = arith.constant 0 : index
    %c0_14 = arith.constant 0 : index
    %c0_15 = arith.constant 0 : index
    %33 = vector.load %arg4[%c0_12, %c0_13, %c0_14, %c0_15] : memref<1x1x1x1xf32, #tpu.memory_space<vmem>>, vector<1x1x1x1xf32>
    %34 = vector.shape_cast %33 : vector<1x1x1x1xf32> to vector<1x1xf32>
    %35 = vector.shape_cast %32 : vector<1x1xf32> to vector<1x1x1x1xf32>
    tpu.vector_store %arg4[%c0_12, %c0_13, %c0_14, %c0_15], %35 {strides = array<i32>} : memref<1x1x1x1xf32, #tpu.memory_space<vmem>>, vector<1x1x1x1xf32>,
    %36 = vector.shape_cast %27 : vector<1x256xf32> to vector<1x1x256xf32>
    %cst_16 = arith.constant dense<0.000000e+00> : vector<1xf32>
    %37 = vector.multi_reduction <add>, %36, %cst_16 [1, 2] : vector<1x1x256xf32> to vector<1xf32>
    %38 = vector.shape_cast %37 : vector<1xf32> to vector<1x1x1xf32>
    %39 = vector.extract %38[0, 0, 0] : f32 from vector<1x1x1xf32>
    %40 = vector.broadcast %39 : f32 to vector<1x1xf32>
    %c0_17 = arith.constant 0 : index
    %c0_18 = arith.constant 0 : index
    %c0_19 = arith.constant 0 : index
    %c0_20 = arith.constant 0 : index
    %41 = vector.load %arg5[%c0_17, %c0_18, %c0_19, %c0_20] : memref<1x1x1x1xf32, #tpu.memory_space<vmem>>, vector<1x1x1x1xf32>
    %42 = vector.shape_cast %41 : vector<1x1x1x1xf32> to vector<1x1xf32>
    %43 = vector.shape_cast %40 : vector<1x1xf32> to vector<1x1x1x1xf32>
    tpu.vector_store %arg5[%c0_17, %c0_18, %c0_19, %c0_20], %43 {strides = array<i32>} : memref<1x1x1x1xf32, #tpu.memory_space<vmem>>, vector<1x1x1x1xf32>,
    return
  }
  func.func @transform_0(%arg0: i32, %arg1: i32) -> (i32, i32, i32) {
    %c0_i32 = arith.constant 0 : i32
    %c0_i32_0 = arith.constant 0 : i32
    return %arg0, %c0_i32, %arg1 : i32, i32, i32
  }
  func.func @transform_1(%arg0: i32, %arg1: i32) -> (i32, i32, i32) {
    %c0_i32 = arith.constant 0 : i32
    %c0_i32_0 = arith.constant 0 : i32
    return %arg0, %c0_i32, %arg1 : i32, i32, i32
  }
  func.func @transform_2(%arg0: i32, %arg1: i32) -> (i32, i32, i32, i32) {
    %c0_i32 = arith.constant 0 : i32
    %c0_i32_0 = arith.constant 0 : i32
    %c0_i32_1 = arith.constant 0 : i32
    return %arg0, %arg1, %c0_i32, %c0_i32_0 : i32, i32, i32, i32
  }
  func.func @transform_3(%arg0: i32, %arg1: i32) -> (i32, i32, i32, i32) {
    %c0_i32 = arith.constant 0 : i32
    %c0_i32_0 = arith.constant 0 : i32
    %c0_i32_1 = arith.constant 0 : i32
    return %arg0, %arg1, %c0_i32, %c0_i32_0 : i32, i32, i32, i32
  }
}

</mosaic_0001>

<bundles_post_ra>
// kernel: tpu_custom_call.1
= control target key start
LH: loop header
LB: loop body
LE: loop exit
PB: predicated region body
PF: predicated region fallthrough
CT: control target
= control target key end

     0   :  { %9 = vsyncpa [#allocation3], 0  ;;  %vm30_vm0 = vcmask 1043456   ;;  %v15_v14 = vlaneseq  ;;  %s596_s0 = inlined_call_operand.vmem [shape: f32[2,12,256], index: 0, kind: input, shape index: {}]   ;;  %s597_s1 = inlined_call_operand.vmem [shape: s32[2,1,256], index: 1, kind: input, shape index: {}]   ;;  %s598_s2 = inlined_call_operand.hbm [shape: f32[1,1,1,1], index: 2, kind: output, shape index: {0}]   ;;  %s599_s3 = inlined_call_operand.hbm [shape: f32[1,1,1,1], index: 3, kind: output, shape index: {1}]  }
   0x1   :  { %v408_v0 = vld [vmem:[%s596_s0] sm:$0xff]  ;;  %v413_v1 = vld [vmem:[%s596_s0 + $0x8] sm:$0xff]  ;;  %v418_v2 = vld [vmem:[%s596_s0 + $0x10] sm:$0xf] }
   0x2   :  { %v423_v3 = vld [vmem:[%s596_s0 + $0x18] sm:$0xf]  ;;  %v428_v4 = vld [vmem:[%s596_s0 + $0x20] sm:$0xff]  ;;  %v31_v5 = vsel %vm30_vm0, %v418_v2, -inf  ;;  %v435_v6 = vld [vmem:[%s596_s0 + $0x28] sm:$0xff] }
   0x3   :  { %v440_v7 = vld [vmem:[%s596_s0 + $0x30] sm:$0xf]  ;;  %v445_v8 = vld [vmem:[%s596_s0 + $0x38] sm:$0xf]  ;;  %v32_v9 = vmax.f32 %v408_v0, %v31_v5  ;;  %v39_v10 = vsel %vm30_vm0, %v423_v3, -inf }
   0x4   :  { %v40_v11 = vmax.f32 %v413_v1, %v39_v10  ;;  %v47_v12 = vsel %vm30_vm0, %v440_v7, -inf  ;;  %v55_v13 = vsel %vm30_vm0, %v445_v8, -inf }
   0x5   :  { %v33_v15 = vrot.slane %v32_v9, 4 }
   0x6   :  { %10 = vsyncpa [#allocation5], 0  ;;  %v41_v16 = vrot.slane %v40_v11, 4  ;;  %v48_v17 = vmax.f32 %v428_v4, %v47_v12  ;;  %v56_v18 = vmax.f32 %v435_v6, %v55_v13  ;;  %v457_v23 = vshrl.u32 %v15_v14, 7  ;;  %v462_v25 = vld [vmem:[%s597_s1] sm:$0x3] }
   0x7   :  { %v34_v19 = vmax.f32 %v32_v9, %v33_v15  ;;  %v468_v34 = vld [vmem:[%s597_s1 + $0x2] sm:$0x3]  ;;  %v132_v36 = vperm.slane %v462_v25, 1  ;;  %v131_v41 = vperm.slane %v462_v25, 0  ;;  %vm193_vm9 = vcmask 1040384   ;;  %s383_s1 = smov [#allocation2]  }
   0x8   :  { %v42_v20 = vmax.f32 %v40_v11, %v41_v16  ;;  %v49_v21 = vrot.slane %v48_v17, 4  ;;  %v57_v22 = vrot.slane %v56_v18, 4  ;;  %v17_v33 = vadd.s32 8, %v457_v23  ;;  %s270_s4 = sshll.u32 %s383_s1, 4  ;;  %s272_s7 = sshll.u32 %s598_s2, 4  ;;  %s271_s4 = int_to_ptr.vmem [resolvable:$true] %s270_s4  ;;  %s273_s7 = int_to_ptr.hbm [resolvable:$true] %s272_s7 }
   0x9   :  { %v35_v24 = vrot.slane %v34_v19, 2  ;;  %v134_v45 = vperm.slane %v468_v34, 1  ;;  %v133_v48 = vperm.slane %v468_v34, 0  ;;  %vm495_vm2 = vcmp.eq.s32.totalorder %v457_v23, %v131_v41  ;;  %s384_s9 = smov [#allocation4]   ;;  %s283_s13 = sshll.u32 %s599_s3, 4  ;;  %s284_s13 = int_to_ptr.hbm [resolvable:$true] %s283_s13 }
   0xa   :  { %v43_v26 = vrot.slane %v42_v20, 2  ;;  %v50_v27 = vmax.f32 %v48_v17, %v49_v21  ;;  %v58_v28 = vmax.f32 %v56_v18, %v57_v22  ;;  %vm482_vm1 = vcmp.eq.s32.totalorder %v17_v33, %v132_v36  ;;  %s281_s10 = sshll.u32 %s384_s9, 4  ;;  %s282_s10 = int_to_ptr.vmem [resolvable:$true] %s281_s10 }
   0xb   :  { %v36_v29 = vmax.f32 %v34_v19, %v35_v24  ;;  %vm499_vm3 = vcmp.eq.s32.totalorder %v17_v33, %v131_v41  ;;  %vm511_vm4 = vcmp.eq.s32.totalorder %v17_v33, %v133_v48  ;;  %vm519_vm5 = vcmp.eq.s32.totalorder %v457_v23, %v132_v36 }
   0xc   :  { %v44_v30 = vmax.f32 %v42_v20, %v43_v26  ;;  %v51_v31 = vrot.slane %v50_v27, 2  ;;  %v59_v32 = vrot.slane %v58_v28, 2  ;;  %v145_v11 = vsel %vm499_vm3, %v418_v2, 0.0 }
   0xd   :  { %v37_v35 = vrot.slane %v36_v29, 1  ;;  %v146_v14 = vsel %vm482_vm1, %v423_v3, 0.0  ;;  %vm527_vm6 = vcmp.eq.s32.totalorder %v457_v23, %v133_v48  ;;  %vm531_vm7 = vcmp.eq.s32.totalorder %v17_v33, %v134_v45 }
   0xe   :  { %v45_v37 = vrot.slane %v44_v30, 1  ;;  %v52_v38 = vmax.f32 %v50_v27, %v51_v31  ;;  %v60_v39 = vmax.f32 %v58_v28, %v59_v32  ;;  %v143_v17 = vsel %vm495_vm2, %v408_v0, 0.0 }
   0xf   :  { %v471_v40 = vmax.f32 %v36_v29, %v37_v35  ;;  %v151_v18 = vsel %vm30_vm0, %v145_v11, 0.0  ;;  %v144_v19 = vsel %vm519_vm5, %v413_v1, 0.0  ;;  %v159_v20 = vsel %vm30_vm0, %v146_v14, 0.0 }
  0x10   :  { %v474_v42 = vmax.f32 %v44_v30, %v45_v37  ;;  %v53_v43 = vrot.slane %v52_v38, 1  ;;  %v61_v44 = vrot.slane %v60_v39, 1  ;;  %vm547_vm8 = vcmp.eq.s32.totalorder %v457_v23, %v134_v45 }
  0x11   :  { %v63_v46 = vsub.f32 %v408_v0, %v471_v40  ;;  %v65_v47 = vsub.f32 %v418_v2, %v471_v40  ;;  %v150_v0 = vsel %vm531_vm7, %v445_v8, 0.0  ;;  %v147_v24 = vsel %vm527_vm6, %v428_v4, 0.0 }
  0x12   :  { %v486_v50 = vmax.f32 %v52_v38, %v53_v43  ;;  %v488_v51 = vmax.f32 %v60_v39, %v61_v44  ;;  %v64_v52 = vsub.f32 %v413_v1, %v474_v42  ;;  %v66_v53 = vsub.f32 %v423_v3, %v474_v42 }
  0x13   :  { %v71_v54 = vmul.f32 1.442695, %v63_v46  ;;  %v75_v55 = vmul.f32 1.442695, %v65_v47  ;;  %v149_v3 = vsel %vm511_vm4, %v440_v7, 0.0  ;;  %v152_v1 = vadd.f32 %v151_v18, %v143_v17 }
  0x14   :  { %v67_v58 = vsub.f32 %v428_v4, %v486_v50  ;;  %v68_v59 = vsub.f32 %v435_v6, %v488_v51  ;;  %v69_v60 = vsub.f32 %v440_v7, %v486_v50  ;;  %v70_v61 = vsub.f32 %v445_v8, %v488_v51 }
  0x15   :  { %306 = vpow2.f32 %v71_v54  ;;  %v73_v62 = vmul.f32 1.442695, %v64_v52  ;;  %v77_v63 = vmul.f32 1.442695, %v66_v53  ;;  %v167_v26 = vsel %vm30_vm0, %v149_v3, 0.0 }
  0x16   :  { %308 = vpow2.f32 %v75_v55  ;;  %v79_v9 = vmul.f32 1.442695, %v67_v58  ;;  %v81_v10 = vmul.f32 1.442695, %v68_v59  ;;  %v83_v12 = vmul.f32 1.442695, %v69_v60 }
  0x17   :  { %310 = vpow2.f32 %v73_v62  ;;  %v85_v15 = vmul.f32 1.442695, %v70_v61  ;;  %v160_v23 = vadd.f32 %v159_v20, %v144_v19  ;;  %v148_v31 = vsel %vm547_vm8, %v435_v6, 0.0 }
  0x18   :  { %312 = vpow2.f32 %v77_v63  ;;  %v175_v8 = vsel %vm30_vm0, %v150_v0, 0.0  ;;  %v168_v35 = vadd.f32 %v167_v26, %v147_v24  ;;  %v153_v38 = vrot.slane %v152_v1, 4 }
  0x19   :  { %314 = vpow2.f32 %v79_v9  ;;  %v161_v41 = vrot.slane %v160_v23, 4  ;;  %v176_v43 = vadd.f32 %v175_v8, %v148_v31  ;;  %vm28_vm10 = vcmp.ne.s32.totalorder %v462_v25, 11 }
  0x1a   :  { %316 = vpow2.f32 %v81_v10  ;;  %v169_v49 = vrot.slane %v168_v35, 4  ;;  %v154_v55 = vadd.f32 %v153_v38, %v152_v1  ;;  %vm29_vm11 = vcmp.ne.s32.totalorder %v468_v34, 11 }
  0x1b   :  { %v307_v21 = vpop.eup %306  ;;  %318 = vpow2.f32 %v83_v12  ;;  %v162_v57 = vadd.f32 %v161_v41, %v160_v23  ;;  %v177_v58 = vrot.slane %v176_v43, 4  ;;  %vm249_vm12 = vcmask 0  }
  0x1c   :  { %v309_v7 = vpop.eup %308  ;;  %320 = vpow2.f32 %v85_v15  ;;  %v170_v63 = vadd.f32 %v169_v49, %v168_v35  ;;  %v155_v11 = vrot.slane %v154_v55, 2 }
  0x1d   :  { %v311_v27 = vpop.eup %310  ;;  %v87_v28 = vsel %vm30_vm0, %v309_v7, 0.0  ;;  %v163_v13 = vrot.slane %v162_v57, 2  ;;  %v178_v14 = vadd.f32 %v177_v58, %v176_v43 }
  0x1e   :  { %v313_v29 = vpop.eup %312  ;;  %v88_v30 = vadd.f32 %v307_v21, %v87_v28  ;;  %v171_v3 = vrot.slane %v170_v63, 2  ;;  %v156_v20 = vadd.f32 %v155_v11, %v154_v55 }
  0x1f   :  { %v315_v32 = vpop.eup %314  ;;  %v95_v33 = vsel %vm30_vm0, %v313_v29, 0.0  ;;  %v164_v22 = vadd.f32 %v163_v13, %v162_v57  ;;  %v179_v0 = vrot.slane %v178_v14, 2 }
  0x20   :  { %v317_v4 = vpop.eup %316  ;;  %v89_v36 = vrot.slane %v88_v30, 4  ;;  %v96_v37 = vadd.f32 %v311_v27, %v95_v33  ;;  %v157_v26 = vrot.slane %v156_v20, 1  ;;  %v172_v27 = vadd.f32 %v171_v3, %v170_v63 }
  0x21   :  { %v319_v39 = vpop.eup %318  ;;  %v165_v28 = vrot.slane %v164_v22, 1  ;;  %v180_v23 = vadd.f32 %v179_v0, %v178_v14 }
  0x22   :  { %v321_v44 = vpop.eup %320  ;;  %v90_v45 = vadd.f32 %v89_v36, %v88_v30  ;;  %v97_v46 = vrot.slane %v96_v37, 4  ;;  %v103_v47 = vsel %vm30_vm0, %v319_v39, 0.0  ;;  %v158_v8 = vadd.f32 %v157_v26, %v156_v20 }
  0x23   :  { %v104_v48 = vadd.f32 %v315_v32, %v103_v47  ;;  %v111_v6 = vsel %vm30_vm0, %v321_v44, 0.0  ;;  %v173_v32 = vrot.slane %v172_v27, 1  ;;  %v181_v36 = vrot.slane %v180_v23, 1 }
  0x24   :  { %v91_v52 = vrot.slane %v90_v45, 2  ;;  %v98_v53 = vadd.f32 %v97_v46, %v96_v37  ;;  %v112_v54 = vadd.f32 %v317_v4, %v111_v6  ;;  %v166_v4 = vadd.f32 %v165_v28, %v164_v22 }
  0x25   :  { %v105_v56 = vrot.slane %v104_v48, 4  ;;  %v174_v43 = vadd.f32 %v173_v32, %v172_v27 }
  0x26   :  { %v92_v59 = vadd.f32 %v91_v52, %v90_v45  ;;  %v99_v60 = vrot.slane %v98_v53, 2  ;;  %v113_v61 = vrot.slane %v112_v54, 4  ;;  %v182_v45 = vadd.f32 %v181_v36, %v180_v23 }
  0x27   :  { %v106_v62 = vadd.f32 %v105_v56, %v104_v48 }
  0x28   :  { %v93_v5 = vrot.slane %v92_v59, 1  ;;  %v100_v9 = vadd.f32 %v99_v60, %v98_v53  ;;  %v114_v10 = vadd.f32 %v113_v61, %v112_v54  ;;  %v382_v53 = vmov 0.0  }
  0x29   :  { %v107_v12 = vrot.slane %v106_v62, 2  ;;  %v297_v54 = vsel %vm28_vm10, 1.0, %v382_v53  ;;  %v298_v56 = vsel %vm29_vm11, 1.0, %v382_v53 }
  0x2a   :  { %v94_v15 = vadd.f32 %v93_v5, %v92_v59  ;;  %v101_v16 = vrot.slane %v100_v9, 1  ;;  %v115_v2 = vrot.slane %v114_v10, 2  ;;  %v222_v59 = vperm.slane %v297_v54, 0 }
  0x2b   :  { %v108_v17 = vadd.f32 %v107_v12, %v106_v62  ;;  %v223_v25 = vperm.slane %v297_v54, 1  ;;  %v224_v60 = vperm.slane %v298_v56, 0  ;;  %v225_v61 = vperm.slane %v298_v56, 1 }
  0x2c   :  { %v102_v18 = vadd.f32 %v101_v16, %v100_v9  ;;  %v116_v19 = vadd.f32 %v115_v2, %v114_v10  ;;  %322 = vlog2.f32 %v94_v15  ;;  %v230_v11 = vsel %vm193_vm9, %v222_v59, 0.0 }
  0x2d   :  { %v109_v21 = vrot.slane %v108_v17, 1  ;;  %v233_v12 = vsel %vm193_vm9, %v223_v25, 0.0  ;;  %v231_v15 = vsel %vm193_vm9, %v224_v60, 0.0  ;;  %v234_v16 = vsel %vm193_vm9, %v225_v61, 0.0 }
  0x2e   :  { %v117_v7 = vrot.slane %v116_v19, 1  ;;  %324 = vlog2.f32 %v102_v18  ;;  %v232_v18 = vadd.f32 %v231_v15, %v230_v11 }
  0x2f   :  { %v110_v24 = vadd.f32 %v109_v21, %v108_v17 }
  0x30   :  { %v118_v1 = vadd.f32 %v117_v7, %v116_v19  ;;  %v235_v19 = vadd.f32 %v234_v16, %v233_v12  ;;  %v251_v21 = vsel %vm193_vm9, %v232_v18, 0.0 }
  0x31   :  { %326 = vlog2.f32 %v110_v24 }
  0x32   :  { %v323_v29 = vpop.eup %322  ;;  %328 = vlog2.f32 %v118_v1  ;;  %v252_v22 = vsel %vm193_vm9, %v235_v19, 0.0 }
  0x33   :  { %v120_v30 = vmul.f32 0.6931472, %v323_v29  ;;  %v253_v0 = vadd.f32 %v252_v22, %v251_v21 }
  0x34   :  { %v325_v31 = vpop.eup %324 }
  0x35   :  { %v122_v33 = vmul.f32 0.6931472, %v325_v31  ;;  %v127_v35 = vadd.f32 %v120_v30, %v471_v40 }
  0x37   :  { %v327_v37 = vpop.eup %326  ;;  %v128_v38 = vadd.f32 %v122_v33, %v474_v42  ;;  %v183_v46 = vsub.f32 %v127_v35, %v158_v8 }
  0x38   :  { %v329_v39 = vpop.eup %328  ;;  %v124_v41 = vmul.f32 0.6931472, %v327_v37 }
  0x39   :  { %v126_v44 = vmul.f32 0.6931472, %v329_v39  ;;  %v184_v47 = vsub.f32 %v128_v38, %v166_v4 }
  0x3a   :  { %v129_v48 = vadd.f32 %v124_v41, %v486_v50 }
  0x3b   :  { %v130_v6 = vadd.f32 %v126_v44, %v488_v51  ;;  %v191_v40 = vrot.slane %v184_v47, 7 }
  0x3c   :  { %v185_v49 = vsub.f32 %v129_v48, %v174_v43 }
  0x3d   :  { %v186_v52 = vsub.f32 %v130_v6, %v182_v45  ;;  %v194_v42 = vsel %vm193_vm9, %v183_v46, %v191_v40 }
  0x3e   :  { %v198_v55 = vsel %vm28_vm10, %v194_v42, 0.0 }
  0x3f   :  { %v192_v57 = vrot.slane %v186_v52, 7  ;;  %v202_v50 = vperm.slane %v198_v55, 0  ;;  %v203_v58 = vperm.slane %v198_v55, 1 }
  0x41   :  { %v195_v51 = vsel %vm193_vm9, %v185_v49, %v192_v57  ;;  %v210_v9 = vsel %vm193_vm9, %v202_v50, 0.0  ;;  %v213_v10 = vsel %vm193_vm9, %v203_v58, 0.0 }
  0x42   :  { %v199_v62 = vsel %vm29_vm11, %v195_v51, 0.0 }
  0x43   :  { %v204_v63 = vperm.slane %v199_v62, 0  ;;  %v205_v5 = vperm.slane %v199_v62, 1 }
  0x45   :  { %v211_v13 = vsel %vm193_vm9, %v204_v63, 0.0  ;;  %v214_v14 = vsel %vm193_vm9, %v205_v5, 0.0 }
  0x46   :  { %v212_v34 = vadd.f32 %v211_v13, %v210_v9  ;;  %v215_v2 = vadd.f32 %v214_v14, %v213_v10 }
  0x48   :  { %v236_v17 = vsel %vm193_vm9, %v212_v34, 0.0  ;;  %v237_v3 = vsel %vm193_vm9, %v215_v2, 0.0 }
  0x49   :  { %v238_v20 = vadd.f32 %v237_v3, %v236_v17 }
  0x4b   :  { %239 = vadd.xlane.f32.xlu0 %v238_v20 }
  0x53   :  { %254 = vadd.xlane.f32.xlu0 %v253_v0 }
  0xbe   :  { %v240_v7 = vpop.xlane.xlu0 %239 }
  0xbf   :  { %v241_v24 = vrot.slane %v240_v7, 4 }
  0xc1   :  { %v242_v1 = vadd.f32 %v241_v24, %v240_v7 }
  0xc3   :  { %v243_v26 = vrot.slane %v242_v1, 2 }
  0xc5   :  { %v244_v27 = vadd.f32 %v243_v26, %v242_v1 }
  0xc6   :  { %v255_v28 = vpop.xlane.xlu0 %254 }
  0xc7   :  { %v256_v23 = vrot.slane %v255_v28, 4  ;;  %v245_v29 = vrot.slane %v244_v27, 1 }
  0xc9   :  { %v257_v30 = vadd.f32 %v256_v23, %v255_v28  ;;  %v246_v31 = vadd.f32 %v245_v29, %v244_v27 }
  0xcb   :  { %v258_v8 = vrot.slane %v257_v30, 2  ;;  %299 = vpush %v246_v31 }
  0xcd   :  { %v259_v32 = vadd.f32 %v258_v8, %v257_v30 }
  0xcf   :  { %v260_v33 = vrot.slane %v259_v32, 1 }
  0xd1   :  { %v261_v35 = vadd.f32 %v260_v33, %v259_v32 }
  0xd3   :  { %301 = vpush %v261_v35 }
  0xfc   :  { %s300_s8 = spop %299 }
  0xfd   :  { %v248_v4 = vstv %s300_s8 }
  0xfe   :  { %250 = vst.msk [vmem:[#allocation2] sm:$0x1] %vm249_vm12, %v248_v4 }
  0xff   :  { %275 = dma.vmem_to_hbm [thread:$0]  %s271_s4, 16, %s273_s7, [#allocation3]  }
 0x104   :  { %s302_s14 = spop %301 }
 0x105   :  { %v263_v36 = vstv %s302_s14 }
 0x106   :  { %264 = vst.msk [vmem:[#allocation4] sm:$0x1] %vm249_vm12, %v263_v36 }
 0x107   :  { %286 = dma.vmem_to_hbm [thread:$0]  %s282_s10, 16, %s284_s13, [#allocation5]  }
 0x108   :  { %378 = dma.done.wait [#allocation3], 16  }
 0x109   :  { %379 = vsyncadd [#allocation3], 4294967280 }
 0x10a   :  { %380 = dma.done.wait [#allocation5], 16  }
 0x10b   :  { %381 = vsyncadd [#allocation5], 4294967280 }
 0x10c   :  { %295 = vsyncpa [#allocation3], 1 }
 0x10d   :  { %296 = vsyncpa [#allocation5], 1 }

</bundles_post_ra>
